<compile_context>
chip_gen: v5e
topology: v5e:2x2
jax: 0.10.0
libtpu: 0.0.40
codegen_flags: <defaults>
</compile_context>

<pallas_src>
import functools

import jax
import jax.numpy as jnp
from jax.experimental import pallas as pl
from jax.experimental.pallas import tpu as pltpu

LEAKY_RATE = 0.1
_LANE = 128      # TPU lane width (last dim)
_SUBLANE = 8     # TPU sublane width (second-to-last dim)


def _round_up(x, m):
    return ((x + m - 1) // m) * m


# ---------------------------------------------------------------------------
# Kernel: fused pointwise linear (1x1 conv) + bias + (Leaky)ReLU
#   y = act(x @ W + b)   on a (row_tile, Cin) block, lane-dense Cout output
# ---------------------------------------------------------------------------
def _linear_act_kernel(x_ref, w_ref, b_ref, o_ref, *, negative_slope):
    y = jnp.dot(
        x_ref[...].astype(jnp.float32),
        w_ref[...].astype(jnp.float32),
        preferred_element_type=jnp.float32,
    )
    y = y + b_ref[...].astype(jnp.float32)
    if negative_slope == 0.0:
        y = jnp.maximum(y, 0.0)                       # plain ReLU
    else:
        y = jnp.where(y >= 0.0, y, negative_slope * y)  # LeakyReLU
    o_ref[...] = y.astype(o_ref.dtype)


def conv1d_forward(x, weight, bias, *, use_leaky=True,
                   negative_slope=LEAKY_RATE, row_tile=1024):
    """Pallas TPU equivalent of pointconv_util_kitti.Conv1d.forward (bn=False).

    x:      (B, N, Cin)  channel-last input (the module permutes internally)
    weight: (Cout, Cin)  nn.Conv1d weight with kernel_size=1 (squeezed)
    bias:   (Cout,)
    returns (B, N, Cout)
    """
    # NOTE: use_bn=False in the reference, so BatchNorm1d is Identity.  If BN
    # were enabled, its (inference) running stats would be folded into an
    # effective weight/bias before calling this kernel — same code path.
    B, N, Cin = x.shape
    Cout, Cin_w = weight.shape
    assert Cin_w == Cin
    slope = float(negative_slope) if use_leaky else 0.0

    # Lane-dense output: pad Cout up to a multiple of 128 so every store is a
    # full-width vst; padding columns of W / b are zero and sliced off below.
    Cout_p = _round_up(Cout, _LANE)
    w_t = jnp.zeros((Cin, Cout_p), weight.dtype).at[:, :Cout].set(weight.T)
    b_p = jnp.zeros((1, Cout_p), bias.dtype).at[0, :Cout].set(bias)

    # Flatten points and pad the row count to the tile (never a degenerate
    # single full-array block; padded rows are sliced off afterwards).
    R = B * N
    tm = min(row_tile, _round_up(R, _SUBLANE))
    R_p = _round_up(R, tm)
    x_flat = x.reshape(R, Cin)
    if R_p != R:
        x_flat = jnp.pad(x_flat, ((0, R_p - R), (0, 0)))

    kernel = functools.partial(_linear_act_kernel, negative_slope=slope)
    out_p = pl.pallas_call(
        kernel,
        out_shape=jax.ShapeDtypeStruct((R_p, Cout_p), x.dtype),
        grid=(R_p // tm,),
        in_specs=[
            pl.BlockSpec((tm, Cin), lambda i: (i, 0)),        # activations tile
            pl.BlockSpec((Cin, Cout_p), lambda i: (0, 0)),    # weights (resident)
            pl.BlockSpec((1, Cout_p), lambda i: (0, 0)),      # bias (resident)
        ],
        out_specs=pl.BlockSpec((tm, Cout_p), lambda i: (i, 0)),
        compiler_params=pltpu.CompilerParams(
            dimension_semantics=("parallel",),     # shard rows across TCs (v7x)
            vmem_limit_bytes=32 * 1024 * 1024,     # headroom under v7x 64 MiB
        ),
    )(x_flat, w_t, b_p)

    return out_p[:R, :Cout].reshape(B, N, Cout)


# ---------------------------------------------------------------------------
if __name__ == "__main__":
    key = jax.random.PRNGKey(0)
    kx, kw, kb = jax.random.split(key, 3)

    # Small shapes consistent with the module: batch=2, npoints=16,
    # in_channels=4, out_channels=32.
    B, N, Cin, Cout = 2, 16, 4, 32
    x = jax.random.normal(kx, (B, N, Cin), jnp.float32)
    w = jax.random.normal(kw, (Cout, Cin), jnp.float32) / jnp.sqrt(float(Cin))
    b = 0.01 * jax.random.normal(kb, (Cout,), jnp.float32)

    out = conv1d_forward(x, w, b, use_leaky=True)
    out = jax.block_until_ready(out)

    # Reference: y = leaky_relu(x @ W^T + b, 0.1)  (BN is Identity, use_bn=False)
    ref = x @ w.T + b
    ref = jnp.where(ref >= 0.0, ref, LEAKY_RATE * ref)

    assert out.shape == (B, N, Cout), out.shape
    assert jnp.all(jnp.isfinite(out))
    assert jnp.allclose(out, ref, atol=1e-5, rtol=1e-5), float(
        jnp.max(jnp.abs(out - ref)))
    print("KERNEL_OK")
</pallas_src>

<mosaic_0001>
module attributes {stable_mosaic.version = 11 : i64} {
  func.func @_linear_act_kernel(%arg0: i32, %arg1: memref<32x4xf32, #tpu.memory_space<vmem>>, %arg2: memref<4x128xf32, #tpu.memory_space<vmem>>, %arg3: memref<1x128xf32, #tpu.memory_space<vmem>>, %arg4: memref<32x128xf32, #tpu.memory_space<vmem>>) attributes {dimension_semantics = [#tpu.dimension_semantics<parallel>], iteration_bounds = array<i64: 1>, scalar_prefetch = 0 : i64, scratch_operands = 0 : i64, tpu.core_type = #tpu.core_type<tc>, window_params = [{transform_indices = @transform_0, window_bounds = array<i64: 32, 4>}, {pipeline_mode = #tpu.pipeline_mode<synchronous>, transform_indices = @transform_1, window_bounds = array<i64: 4, 128>}, {pipeline_mode = #tpu.pipeline_mode<synchronous>, transform_indices = @transform_2, window_bounds = array<i64: 1, 128>}, {transform_indices = @transform_3, window_bounds = array<i64: 32, 128>}]} {
    %c0 = arith.constant 0 : index
    %c0_0 = arith.constant 0 : index
    %0 = vector.load %arg1[%c0, %c0_0] : memref<32x4xf32, #tpu.memory_space<vmem>>, vector<32x4xf32>
    %c0_1 = arith.constant 0 : index
    %c0_2 = arith.constant 0 : index
    %1 = vector.load %arg2[%c0_1, %c0_2] : memref<4x128xf32, #tpu.memory_space<vmem>>, vector<4x128xf32>
    %cst = arith.constant dense<0.000000e+00> : vector<32x128xf32>
    %2 = tpu.matmul %0, %1, %cst {dimension_numbers = #tpu.dot_dimension_numbers<[1], [0], [0], [1], [0, 0, 1, 1], [], []>} : vector<32x4xf32>, vector<4x128xf32>, vector<32x128xf32> -> vector<32x128xf32>
    %c0_3 = arith.constant 0 : index
    %c0_4 = arith.constant 0 : index
    %3 = vector.load %arg3[%c0_3, %c0_4] : memref<1x128xf32, #tpu.memory_space<vmem>>, vector<1x128xf32>
    %4 = vector.broadcast %3 : vector<1x128xf32> to vector<32x128xf32>
    %5 = arith.addf %2, %4 : vector<32x128xf32>
    %cst_5 = arith.constant 0.000000e+00 : f32
    %6 = vector.broadcast %cst_5 : f32 to vector<32x128xf32>
    %7 = arith.cmpf oge, %5, %6 : vector<32x128xf32>
    %cst_6 = arith.constant 1.000000e-01 : f32
    %8 = vector.broadcast %cst_6 : f32 to vector<32x128xf32>
    %9 = arith.mulf %8, %5 : vector<32x128xf32>
    %10 = arith.select %7, %5, %9 : vector<32x128xi1>, vector<32x128xf32>
    %c0_7 = arith.constant 0 : index
    %c0_8 = arith.constant 0 : index
    %11 = vector.load %arg4[%c0_7, %c0_8] : memref<32x128xf32, #tpu.memory_space<vmem>>, vector<32x128xf32>
    tpu.vector_store %arg4[%c0_7, %c0_8], %10 {strides = array<i32>} : memref<32x128xf32, #tpu.memory_space<vmem>>, vector<32x128xf32>,
    return
  }
  func.func @transform_0(%arg0: i32) -> (i32, i32) {
    %c0_i32 = arith.constant 0 : i32
    %c0_i32_0 = arith.constant 0 : i32
    return %arg0, %c0_i32 : i32, i32
  }
  func.func @transform_1(%arg0: i32) -> (i32, i32) {
    %c0_i32 = arith.constant 0 : i32
    %c0_i32_0 = arith.constant 0 : i32
    %c0_i32_1 = arith.constant 0 : i32
    return %c0_i32, %c0_i32_0 : i32, i32
  }
  func.func @transform_2(%arg0: i32) -> (i32, i32) {
    %c0_i32 = arith.constant 0 : i32
    %c0_i32_0 = arith.constant 0 : i32
    %c0_i32_1 = arith.constant 0 : i32
    return %c0_i32, %c0_i32_0 : i32, i32
  }
  func.func @transform_3(%arg0: i32) -> (i32, i32) {
    %c0_i32 = arith.constant 0 : i32
    %c0_i32_0 = arith.constant 0 : i32
    return %arg0, %c0_i32 : i32, i32
  }
}

</mosaic_0001>

<bundles_post_ra>
// kernel: tpu_custom_call.1
= control target key start
LH: loop header
LB: loop body
LE: loop exit
PB: predicated region body
PF: predicated region fallthrough
CT: control target
= control target key end

     0   :  { %vm37_vm0 = vcmask 1043456   ;;  %vm24_vm1 = vcmask 31744   ;;  %s186_s0 = inlined_call_operand.vmem [shape: f32[32,4], index: 0, kind: input, shape index: {}]   ;;  %s187_s1 = inlined_call_operand.vmem [shape: f32[4,128], index: 1, kind: input, shape index: {}]   ;;  %s188_s2 = inlined_call_operand.vmem [shape: f32[1,128], index: 2, kind: input, shape index: {}]   ;;  %s189_s3 = inlined_call_operand.hbm [shape: f32[32,128], index: 3, kind: output, shape index: {}]  }
   0x1   :  { %v19_v0 = vld [vmem:[%s187_s1] sm:$0xf]  ;;  %v17_v1 = vld [vmem:[%s186_s0 + $0x10] sm:$0xff]  ;;  %v18_v2 = vld [vmem:[%s186_s0 + $0x18] sm:$0xff] }
   0x2   :  { %110 = vmatpush.msk.msra.mxu2 %vm37_vm0, %v19_v0  ;;  %111 = vmatpush.msk.msra.mxu3 %vm37_vm0, %v19_v0  ;;  %v15_v3 = vld [vmem:[%s186_s0] sm:$0xff]  ;;  %v16_v4 = vld [vmem:[%s186_s0 + $0x8] sm:$0xff] }
   0x3   :  { %107 = vmatmul.msk.f32.vlgmr.msra.gmra.mxu2 %vm24_vm1, %v17_v1  ;;  %108 = vmatmul.msk.f32.vlgmr.msra.gmra.mxu3 %vm24_vm1, %v18_v2 }
   0x4   :  { %8 = vsyncpa [#allocation3], 0  ;;  %104 = vmatpush.msk.msra.mxu0 %vm37_vm0, %v19_v0  ;;  %109 = vmatpush.msk.msra.mxu1 %vm37_vm0, %v19_v0  ;;  %v115_v5 = vld [vmem:[%s188_s2] ss:$0 sm:$0xff]  ;;  %s142_s0 = smov [#allocation2]   ;;  %s92_s2 = sshll.u32 %s189_s3, 4  ;;  %s93_s2 = int_to_ptr.hbm [resolvable:$true] %s92_s2 }
   0x5   :  { %105 = vmatmul.msk.f32.vlgmr.msra.gmra.mxu0 %vm24_vm1, %v15_v3  ;;  %106 = vmatmul.msk.f32.vlgmr.msra.gmra.mxu1 %vm24_vm1, %v16_v4  ;;  %s90_s23 = sshll.u32 %s142_s0, 4  ;;  %s143_s26 = smov 128   ;;  %s91_s23 = int_to_ptr.vmem [resolvable:$true] %s90_s23 }
   0x6   :  { %s144_s27 = smov 8  }
  0x82   :  { %v58_v6 = vpop.f32.mrf.mxu0  ;;  %v61_v7 = vpop.f32.mrf.mxu1 }
  0x83   :  { %v59_v8 = vadd.f32 %v115_v5, %v58_v6  ;;  %v62_v9 = vadd.f32 %v115_v5, %v61_v7 }
  0x85   :  { %vm70_vm2 = vcmp.ge.f32.partialorder %v59_v8, 0.0  ;;  %v74_v10 = vmul.f32 0.1, %v59_v8  ;;  %vm71_vm3 = vcmp.ge.f32.partialorder %v62_v9, 0.0  ;;  %v75_v11 = vmul.f32 0.1, %v62_v9 }
  0x86   :  { %v64_v12 = vpop.f32.mrf.mxu2  ;;  %v67_v13 = vpop.f32.mrf.mxu3 }
  0x87   :  { %v78_v14 = vsel %vm70_vm2, %v59_v8, %v74_v10  ;;  %v79_v15 = vsel %vm71_vm3, %v62_v9, %v75_v11  ;;  %v65_v16 = vadd.f32 %v115_v5, %v64_v12  ;;  %v68_v17 = vadd.f32 %v115_v5, %v67_v13 }
  0x88   :  { %82 = vst [vmem:[#allocation2] sm:$0xff] %v78_v14 }
  0x89   :  { %83 = vst [vmem:[#allocation2 + $0x8] sm:$0xff] %v79_v15  ;;  %vm72_vm4 = vcmp.ge.f32.partialorder %v65_v16, 0.0  ;;  %v76_v18 = vmul.f32 0.1, %v65_v16  ;;  %vm73_vm5 = vcmp.ge.f32.partialorder %v68_v17, 0.0 }
  0x8a   :  { %v77_v19 = vmul.f32 0.1, %v68_v17 }
  0x8b   :  { %v80_v20 = vsel %vm72_vm4, %v65_v16, %v76_v18 }
  0x8c   :  { %84 = vst [vmem:[#allocation2 + $0x10] sm:$0xff] %v80_v20  ;;  %v81_v21 = vsel %vm73_vm5, %v68_v17, %v77_v19 }
  0x8d   :  { %85 = vst [vmem:[#allocation2 + $0x18] sm:$0xff] %v81_v21 }
  0x8e   :  { %98 = dma.vmem_to_hbm [thread:$0]  %s91_s23, 512, %s93_s2, [#allocation3], %s143_s26, %s143_s26, %s144_s27  }
  0x8f   :  { %140 = dma.done.wait [#allocation3], 512  }
  0x90   :  { %141 = vsyncadd [#allocation3], 4294966784 }
  0x91   :  { %103 = vsyncpa [#allocation3], 1 }

</bundles_post_ra>
